<compile_context>
chip_gen: v5e
topology: v5e:2x2
jax: 0.10.0
libtpu: 0.0.40
codegen_flags: <defaults>
</compile_context>

<pallas_src>
import functools

import jax
import jax.numpy as jnp
from jax.experimental import pallas as pl
from jax.experimental.pallas import tpu as pltpu

LANE = 128


def _round_up(x, m):
    return ((x + m - 1) // m) * m


# ------------------------------ fused kernel --------------------------------


def _cvae_kernel(lab_ref, x_ref, eps_ref, wl_ref, *rest,
                 n_enc, n_dec, offs, widths, lat_pad):
    """Whole CVAE forward for one batch tile.

    rest = (enc_w0..enc_w{n_enc-1}, dec_w0..dec_w{n_dec-1},
            recon_ref, mu_ref, log_var_ref)
    """
    n_w = n_enc + n_dec
    w_refs = rest[:n_w]
    recon_ref, mu_ref, lv_ref = rest[n_w:]

    # One MXU pass computes (labels @ Wl + b) for *every* layer at once.
    lab_bias = jnp.dot(lab_ref[...], wl_ref[...],
                       preferred_element_type=jnp.float32)  # [BT, sum(out_pad)]

    def dense(h, li):
        off, width = offs[li], widths[li]          # static, lane-aligned slices
        return (jnp.dot(h, w_refs[li][...], preferred_element_type=jnp.float32)
                + lab_bias[:, off:off + width])

    # ---------------- encoder ----------------
    h = x_ref[...]
    for li in range(n_enc - 1):
        y = dense(h, li)
        h = jnp.where(y > 0, y, 0.2 * y)            # LeakyReLU(0.2); Dropout(0)=id
    stats = dense(h, n_enc - 1)                     # [BT, 2*lat_pad]
    mu = stats[:, :lat_pad]
    log_var = stats[:, lat_pad:]

    # ------------- reparameterize ------------
    z = mu + eps_ref[...] * jnp.exp(0.5 * log_var)

    # ---------------- decoder ----------------
    h = z
    for li in range(n_dec - 1):
        y = dense(h, n_enc + li)
        h = jnp.where(y > 0, y, 0.2 * y)
    recon = jnp.tanh(dense(h, n_enc + n_dec - 1))

    recon_ref[...] = recon.astype(recon_ref.dtype)
    mu_ref[...] = mu.astype(mu_ref.dtype)
    lv_ref[...] = log_var.astype(lv_ref.dtype)


# --------------------------- parameter building ------------------------------


def kaiming_linear(key, in_dim, n_classes, out_dim):
    """nn.Linear(in_dim + n_classes, out_dim) with kaiming_normal_(fan_in, relu),
    bias=0.  Returned in torch layout: W [out, in+n_classes], b [out]."""
    fan_in = in_dim + n_classes
    std = (2.0 / fan_in) ** 0.5
    w = std * jax.random.normal(key, (out_dim, fan_in), jnp.float32)
    b = jnp.zeros((out_dim,), jnp.float32)
    return w, b


def build_raw_params(key, in_dim, hidden_dims, n_classes, out_dim):
    """Encoder/Decoder layer list: each Linear sees (prev_dim + n_classes)."""
    dims = [in_dim] + list(hidden_dims) + [out_dim]
    keys = jax.random.split(key, len(dims) - 1)
    return [kaiming_linear(keys[i], dims[i], n_classes, dims[i + 1])
            for i in range(len(dims) - 1)]


def _pad2(a, rows, cols):
    return jnp.pad(a, ((0, rows - a.shape[0]), (0, cols - a.shape[1])))


def pack_cvae_params(enc_raw, dec_raw, n_features, n_classes, latent_dim,
                     hidden_dims):
    """Pad / re-layout raw torch-style params for the fused lane-dense kernel."""
    lat_pad = _round_up(latent_dim, LANE)
    lab_pad = _round_up(n_classes + 1, LANE)          # +1 lane carries the bias

    enc_in = [n_features] + list(hidden_dims)
    dec_in = [latent_dim] + list(hidden_dims)
    enc_in_pad = [_round_up(n_features, LANE)] + [_round_up(h, LANE) for h in hidden_dims]
    dec_in_pad = [lat_pad] + [_round_up(h, LANE) for h in hidden_dims]

    wx_list, wl_cols, widths = [], [], []

    # ---- encoder layers ----
    for li, (w, b) in enumerate(enc_raw):
        in_dim = enc_in[li]
        wx = w[:, :in_dim].T                 # [in, out]
        wl = w[:, in_dim:].T                 # [n_classes, out]
        if li == len(enc_raw) - 1:
            # split mu / log_var halves so each lives in its own 128-lane block
            wx_mu, wx_lv = wx[:, :latent_dim], wx[:, latent_dim:]
            wl_mu, wl_lv = wl[:, :latent_dim], wl[:, latent_dim:]
            b_mu, b_lv = b[:latent_dim], b[latent_dim:]
            out_pad = 2 * lat_pad
            wx_p = jnp.concatenate(
                [_pad2(wx_mu, enc_in_pad[li], lat_pad),
                 _pad2(wx_lv, enc_in_pad[li], lat_pad)], axis=1)
            lab_blk = jnp.concatenate(
                [_pad2(jnp.concatenate([wl_mu, b_mu[None, :]], axis=0), lab_pad, lat_pad),
                 _pad2(jnp.concatenate([wl_lv, b_lv[None, :]], axis=0), lab_pad, lat_pad)],
                axis=1)
        else:
            out_pad = _round_up(w.shape[0], LANE)
            wx_p = _pad2(wx, enc_in_pad[li], out_pad)
            lab_blk = _pad2(jnp.concatenate([wl, b[None, :]], axis=0), lab_pad, out_pad)
        wx_list.append(wx_p)
        wl_cols.append(lab_blk)
        widths.append(out_pad)

    # ---- decoder layers ----
    for li, (w, b) in enumerate(dec_raw):
        in_dim = dec_in[li]
        out_pad = _round_up(w.shape[0], LANE)
        wx = w[:, :in_dim].T
        wl = w[:, in_dim:].T
        wx_list.append(_pad2(wx, dec_in_pad[li], out_pad))
        wl_cols.append(_pad2(jnp.concatenate([wl, b[None, :]], axis=0), lab_pad, out_pad))
        widths.append(out_pad)

    wl_all = jnp.concatenate(wl_cols, axis=1)         # [lab_pad, sum(out_pad)]
    offs, o = [], 0
    for wdt in widths:
        offs.append(o)
        o += wdt

    meta = dict(n_enc=len(enc_raw), n_dec=len(dec_raw),
                offs=tuple(offs), widths=tuple(widths),
                lat_pad=lat_pad, lab_pad=lab_pad,
                in_pad=enc_in_pad[0], out_pad=widths[-1], tot_out=o)
    return wx_list, wl_all, meta


# ------------------------------ CVAE forward ---------------------------------


def cvae_forward(x, labels_onehot, wx_list, wl_all, meta, eps,
                 n_features, n_classes, latent_dim):
    B = x.shape[0]
    lat_pad, lab_pad = meta["lat_pad"], meta["lab_pad"]
    in_pad, out_pad = meta["in_pad"], meta["out_pad"]

    # batch tile: multiple of 8 rows; weights stay VMEM-resident across tiles
    bt = _round_up(min(max(B, 8), 512), 8)
    b_pad = _round_up(B, bt)
    grid = (b_pad // bt,)

    x_p = jnp.zeros((b_pad, in_pad), jnp.float32).at[:B, :n_features].set(x)
    lab_p = jnp.zeros((b_pad, lab_pad), jnp.float32).at[:B, :n_classes].set(labels_onehot)
    lab_p = lab_p.at[:B, n_classes].set(1.0)          # "ones" lane folds in bias
    eps_p = jnp.zeros((b_pad, lat_pad), jnp.float32).at[:B, :latent_dim].set(eps)

    kernel = functools.partial(
        _cvae_kernel, n_enc=meta["n_enc"], n_dec=meta["n_dec"],
        offs=meta["offs"], widths=meta["widths"], lat_pad=lat_pad)

    def batch_spec(cols):
        return pl.BlockSpec((bt, cols), lambda i: (i, 0))

    def full_spec(arr):
        # whole weight, same block for every grid step -> stays VMEM-resident
        return pl.BlockSpec(arr.shape, lambda i: (0, 0))

    in_specs = ([batch_spec(lab_pad), batch_spec(in_pad), batch_spec(lat_pad),
                 full_spec(wl_all)] + [full_spec(w) for w in wx_list])
    out_specs = (batch_spec(out_pad), batch_spec(lat_pad), batch_spec(lat_pad))
    out_shape = (jax.ShapeDtypeStruct((b_pad, out_pad), jnp.float32),
                 jax.ShapeDtypeStruct((b_pad, lat_pad), jnp.float32),
                 jax.ShapeDtypeStruct((b_pad, lat_pad), jnp.float32))

    flops = 2 * b_pad * (lab_pad * meta["tot_out"]
                         + sum(w.shape[0] * w.shape[1] for w in wx_list))
    cost = pl.CostEstimate(
        flops=flops,
        transcendentals=b_pad * (lat_pad + out_pad),
        bytes_accessed=4 * (x_p.size + lab_p.size + eps_p.size + wl_all.size
                            + sum(w.size for w in wx_list)
                            + b_pad * (out_pad + 2 * lat_pad)))

    recon_p, mu_p, lv_p = pl.pallas_call(
        kernel,
        out_shape=out_shape,
        grid=grid,
        in_specs=in_specs,
        out_specs=out_specs,
        compiler_params=pltpu.CompilerParams(
            dimension_semantics=("parallel",),
            vmem_limit_bytes=64 << 20),
        cost_estimate=cost,
    )(lab_p, x_p, eps_p, wl_all, *wx_list)

    return (recon_p[:B, :n_features],
            mu_p[:B, :latent_dim],
            lv_p[:B, :latent_dim])


# --------------------------- pure-JAX reference -------------------------------


def cvae_reference(x, labels, enc_raw, dec_raw, eps, latent_dim):
    def mlp(h, params, final_act):
        for i, (w, b) in enumerate(params):
            h = jnp.concatenate([h, labels], axis=1) @ w.T + b
            if i < len(params) - 1:
                h = jnp.where(h > 0, h, 0.2 * h)
            elif final_act == "tanh":
                h = jnp.tanh(h)
        return h

    stats = mlp(x, enc_raw, "none")
    mu, log_var = stats[:, :latent_dim], stats[:, latent_dim:]
    z = mu + eps * jnp.exp(0.5 * log_var)
    recon = mlp(z, dec_raw, "tanh")
    return recon, mu, log_var


# --------------------------------- main ---------------------------------------


if __name__ == "__main__":
    batch = 8
    n_features = 32
    n_classes = 4
    latent_dim = 8
    hidden_dims = [64, 32]   # CVAE passes the same hidden_dims to Encoder & Decoder

    root = jax.random.PRNGKey(0)
    k_x, k_lab, k_enc, k_dec, k_eps = jax.random.split(root, 5)

    x = jax.random.normal(k_x, (batch, n_features), jnp.float32)
    label_ids = jax.random.randint(k_lab, (batch,), 0, n_classes)
    labels = jax.nn.one_hot(label_ids, n_classes, dtype=jnp.float32)
    # eps ~ N(0,1), same shape as mu / log_var (torch.randn_like(std))
    eps = jax.random.normal(k_eps, (batch, latent_dim), jnp.float32)

    enc_raw = build_raw_params(k_enc, n_features, hidden_dims, n_classes, 2 * latent_dim)
    dec_raw = build_raw_params(k_dec, latent_dim, hidden_dims, n_classes, n_features)
    wx_list, wl_all, meta = pack_cvae_params(
        enc_raw, dec_raw, n_features, n_classes, latent_dim, hidden_dims)

    # jit the wrapper so padding + pallas_call + un-padding fuse into one XLA exec
    fwd = jax.jit(lambda xx, ll, ee: cvae_forward(
        xx, ll, wx_list, wl_all, meta, ee, n_features, n_classes, latent_dim))

    recon, mu, log_var = fwd(x, labels, eps)
    jax.block_until_ready((recon, mu, log_var))

    assert recon.shape == (batch, n_features)
    assert mu.shape == (batch, latent_dim)
    assert log_var.shape == (batch, latent_dim)

    # sanity check against the unpadded pure-JAX reference
    r_ref, mu_ref, lv_ref = cvae_reference(x, labels, enc_raw, dec_raw, eps, latent_dim)
    assert jnp.allclose(recon, r_ref, atol=1e-2, rtol=1e-2)
    assert jnp.allclose(mu, mu_ref, atol=1e-2, rtol=1e-2)
    assert jnp.allclose(log_var, lv_ref, atol=1e-2, rtol=1e-2)

    print("KERNEL_OK")
</pallas_src>

<mosaic_0001>
module attributes {stable_mosaic.version = 11 : i64} {
  func.func @_cvae_kernel(%arg0: i32, %arg1: memref<8x128xf32, #tpu.memory_space<vmem>>, %arg2: memref<8x128xf32, #tpu.memory_space<vmem>>, %arg3: memref<8x128xf32, #tpu.memory_space<vmem>>, %arg4: memref<128x896xf32, #tpu.memory_space<vmem>>, %arg5: memref<128x128xf32, #tpu.memory_space<vmem>>, %arg6: memref<128x128xf32, #tpu.memory_space<vmem>>, %arg7: memref<128x256xf32, #tpu.memory_space<vmem>>, %arg8: memref<128x128xf32, #tpu.memory_space<vmem>>, %arg9: memref<128x128xf32, #tpu.memory_space<vmem>>, %arg10: memref<128x128xf32, #tpu.memory_space<vmem>>, %arg11: memref<8x128xf32, #tpu.memory_space<vmem>>, %arg12: memref<8x128xf32, #tpu.memory_space<vmem>>, %arg13: memref<8x128xf32, #tpu.memory_space<vmem>>) attributes {dimension_semantics = [#tpu.dimension_semantics<parallel>], iteration_bounds = array<i64: 1>, scalar_prefetch = 0 : i64, scratch_operands = 0 : i64, tpu.core_type = #tpu.core_type<tc>, window_params = [{transform_indices = @transform_0, window_bounds = array<i64: 8, 128>}, {transform_indices = @transform_1, window_bounds = array<i64: 8, 128>}, {transform_indices = @transform_2, window_bounds = array<i64: 8, 128>}, {pipeline_mode = #tpu.pipeline_mode<synchronous>, transform_indices = @transform_3, window_bounds = array<i64: 128, 896>}, {pipeline_mode = #tpu.pipeline_mode<synchronous>, transform_indices = @transform_4, window_bounds = array<i64: 128, 128>}, {pipeline_mode = #tpu.pipeline_mode<synchronous>, transform_indices = @transform_5, window_bounds = array<i64: 128, 128>}, {pipeline_mode = #tpu.pipeline_mode<synchronous>, transform_indices = @transform_6, window_bounds = array<i64: 128, 256>}, {pipeline_mode = #tpu.pipeline_mode<synchronous>, transform_indices = @transform_7, window_bounds = array<i64: 128, 128>}, {pipeline_mode = #tpu.pipeline_mode<synchronous>, transform_indices = @transform_8, window_bounds = array<i64: 128, 128>}, {pipeline_mode = #tpu.pipeline_mode<synchronous>, transform_indices = @transform_9, window_bounds = array<i64: 128, 128>}, {transform_indices = @transform_10, window_bounds = array<i64: 8, 128>}, {transform_indices = @transform_11, window_bounds = array<i64: 8, 128>}, {transform_indices = @transform_12, window_bounds = array<i64: 8, 128>}]} {
    %c0 = arith.constant 0 : index
    %c0_0 = arith.constant 0 : index
    %0 = vector.load %arg1[%c0, %c0_0] : memref<8x128xf32, #tpu.memory_space<vmem>>, vector<8x128xf32>
    %c0_1 = arith.constant 0 : index
    %c0_2 = arith.constant 0 : index
    %1 = vector.load %arg4[%c0_1, %c0_2] : memref<128x896xf32, #tpu.memory_space<vmem>>, vector<128x896xf32>
    %cst = arith.constant dense<0.000000e+00> : vector<8x896xf32>
    %2 = tpu.matmul %0, %1, %cst {dimension_numbers = #tpu.dot_dimension_numbers<[1], [0], [0], [1], [0, 0, 1, 1], [], []>} : vector<8x128xf32>, vector<128x896xf32>, vector<8x896xf32> -> vector<8x896xf32>
    %c0_3 = arith.constant 0 : index
    %c0_4 = arith.constant 0 : index
    %3 = vector.load %arg2[%c0_3, %c0_4] : memref<8x128xf32, #tpu.memory_space<vmem>>, vector<8x128xf32>
    %c0_5 = arith.constant 0 : index
    %c0_6 = arith.constant 0 : index
    %4 = vector.load %arg5[%c0_5, %c0_6] : memref<128x128xf32, #tpu.memory_space<vmem>>, vector<128x128xf32>
    %cst_7 = arith.constant dense<0.000000e+00> : vector<8x128xf32>
    %5 = tpu.matmul %3, %4, %cst_7 {dimension_numbers = #tpu.dot_dimension_numbers<[1], [0], [0], [1], [0, 0, 1, 1], [], []>} : vector<8x128xf32>, vector<128x128xf32>, vector<8x128xf32> -> vector<8x128xf32>
    %6 = vector.extract_strided_slice %2 {offsets = [0, 0], sizes = [8, 128], strides = [1, 1]} : vector<8x896xf32> to vector<8x128xf32>
    %7 = arith.addf %5, %6 : vector<8x128xf32>
    %cst_8 = arith.constant 0.000000e+00 : f32
    %8 = vector.broadcast %cst_8 : f32 to vector<8x128xf32>
    %9 = arith.cmpf ogt, %7, %8 : vector<8x128xf32>
    %cst_9 = arith.constant 2.000000e-01 : f32
    %10 = vector.broadcast %cst_9 : f32 to vector<8x128xf32>
    %11 = arith.mulf %10, %7 : vector<8x128xf32>
    %12 = arith.select %9, %7, %11 : vector<8x128xi1>, vector<8x128xf32>
    %c0_10 = arith.constant 0 : index
    %c0_11 = arith.constant 0 : index
    %13 = vector.load %arg6[%c0_10, %c0_11] : memref<128x128xf32, #tpu.memory_space<vmem>>, vector<128x128xf32>
    %cst_12 = arith.constant dense<0.000000e+00> : vector<8x128xf32>
    %14 = tpu.matmul %12, %13, %cst_12 {dimension_numbers = #tpu.dot_dimension_numbers<[1], [0], [0], [1], [0, 0, 1, 1], [], []>} : vector<8x128xf32>, vector<128x128xf32>, vector<8x128xf32> -> vector<8x128xf32>
    %15 = vector.extract_strided_slice %2 {offsets = [0, 128], sizes = [8, 128], strides = [1, 1]} : vector<8x896xf32> to vector<8x128xf32>
    %16 = arith.addf %14, %15 : vector<8x128xf32>
    %cst_13 = arith.constant 0.000000e+00 : f32
    %17 = vector.broadcast %cst_13 : f32 to vector<8x128xf32>
    %18 = arith.cmpf ogt, %16, %17 : vector<8x128xf32>
    %cst_14 = arith.constant 2.000000e-01 : f32
    %19 = vector.broadcast %cst_14 : f32 to vector<8x128xf32>
    %20 = arith.mulf %19, %16 : vector<8x128xf32>
    %21 = arith.select %18, %16, %20 : vector<8x128xi1>, vector<8x128xf32>
    %c0_15 = arith.constant 0 : index
    %c0_16 = arith.constant 0 : index
    %22 = vector.load %arg7[%c0_15, %c0_16] : memref<128x256xf32, #tpu.memory_space<vmem>>, vector<128x256xf32>
    %cst_17 = arith.constant dense<0.000000e+00> : vector<8x256xf32>
    %23 = tpu.matmul %21, %22, %cst_17 {dimension_numbers = #tpu.dot_dimension_numbers<[1], [0], [0], [1], [0, 0, 1, 1], [], []>} : vector<8x128xf32>, vector<128x256xf32>, vector<8x256xf32> -> vector<8x256xf32>
    %24 = vector.extract_strided_slice %2 {offsets = [0, 256], sizes = [8, 256], strides = [1, 1]} : vector<8x896xf32> to vector<8x256xf32>
    %25 = arith.addf %23, %24 : vector<8x256xf32>
    %26 = vector.extract_strided_slice %25 {offsets = [0, 0], sizes = [8, 128], strides = [1, 1]} : vector<8x256xf32> to vector<8x128xf32>
    %27 = vector.extract_strided_slice %25 {offsets = [0, 128], sizes = [8, 128], strides = [1, 1]} : vector<8x256xf32> to vector<8x128xf32>
    %c0_18 = arith.constant 0 : index
    %c0_19 = arith.constant 0 : index
    %28 = vector.load %arg3[%c0_18, %c0_19] : memref<8x128xf32, #tpu.memory_space<vmem>>, vector<8x128xf32>
    %cst_20 = arith.constant 5.000000e-01 : f32
    %29 = vector.broadcast %cst_20 : f32 to vector<8x128xf32>
    %30 = arith.mulf %29, %27 : vector<8x128xf32>
    %31 = math.exp %30 : vector<8x128xf32>
    %32 = arith.mulf %28, %31 : vector<8x128xf32>
    %33 = arith.addf %26, %32 : vector<8x128xf32>
    %c0_21 = arith.constant 0 : index
    %c0_22 = arith.constant 0 : index
    %34 = vector.load %arg8[%c0_21, %c0_22] : memref<128x128xf32, #tpu.memory_space<vmem>>, vector<128x128xf32>
    %cst_23 = arith.constant dense<0.000000e+00> : vector<8x128xf32>
    %35 = tpu.matmul %33, %34, %cst_23 {dimension_numbers = #tpu.dot_dimension_numbers<[1], [0], [0], [1], [0, 0, 1, 1], [], []>} : vector<8x128xf32>, vector<128x128xf32>, vector<8x128xf32> -> vector<8x128xf32>
    %36 = vector.extract_strided_slice %2 {offsets = [0, 512], sizes = [8, 128], strides = [1, 1]} : vector<8x896xf32> to vector<8x128xf32>
    %37 = arith.addf %35, %36 : vector<8x128xf32>
    %cst_24 = arith.constant 0.000000e+00 : f32
    %38 = vector.broadcast %cst_24 : f32 to vector<8x128xf32>
    %39 = arith.cmpf ogt, %37, %38 : vector<8x128xf32>
    %cst_25 = arith.constant 2.000000e-01 : f32
    %40 = vector.broadcast %cst_25 : f32 to vector<8x128xf32>
    %41 = arith.mulf %40, %37 : vector<8x128xf32>
    %42 = arith.select %39, %37, %41 : vector<8x128xi1>, vector<8x128xf32>
    %c0_26 = arith.constant 0 : index
    %c0_27 = arith.constant 0 : index
    %43 = vector.load %arg9[%c0_26, %c0_27] : memref<128x128xf32, #tpu.memory_space<vmem>>, vector<128x128xf32>
    %cst_28 = arith.constant dense<0.000000e+00> : vector<8x128xf32>
    %44 = tpu.matmul %42, %43, %cst_28 {dimension_numbers = #tpu.dot_dimension_numbers<[1], [0], [0], [1], [0, 0, 1, 1], [], []>} : vector<8x128xf32>, vector<128x128xf32>, vector<8x128xf32> -> vector<8x128xf32>
    %45 = vector.extract_strided_slice %2 {offsets = [0, 640], sizes = [8, 128], strides = [1, 1]} : vector<8x896xf32> to vector<8x128xf32>
    %46 = arith.addf %44, %45 : vector<8x128xf32>
    %cst_29 = arith.constant 0.000000e+00 : f32
    %47 = vector.broadcast %cst_29 : f32 to vector<8x128xf32>
    %48 = arith.cmpf ogt, %46, %47 : vector<8x128xf32>
    %cst_30 = arith.constant 2.000000e-01 : f32
    %49 = vector.broadcast %cst_30 : f32 to vector<8x128xf32>
    %50 = arith.mulf %49, %46 : vector<8x128xf32>
    %51 = arith.select %48, %46, %50 : vector<8x128xi1>, vector<8x128xf32>
    %c0_31 = arith.constant 0 : index
    %c0_32 = arith.constant 0 : index
    %52 = vector.load %arg10[%c0_31, %c0_32] : memref<128x128xf32, #tpu.memory_space<vmem>>, vector<128x128xf32>
    %cst_33 = arith.constant dense<0.000000e+00> : vector<8x128xf32>
    %53 = tpu.matmul %51, %52, %cst_33 {dimension_numbers = #tpu.dot_dimension_numbers<[1], [0], [0], [1], [0, 0, 1, 1], [], []>} : vector<8x128xf32>, vector<128x128xf32>, vector<8x128xf32> -> vector<8x128xf32>
    %54 = vector.extract_strided_slice %2 {offsets = [0, 768], sizes = [8, 128], strides = [1, 1]} : vector<8x896xf32> to vector<8x128xf32>
    %55 = arith.addf %53, %54 : vector<8x128xf32>
    %56 = math.tanh %55 : vector<8x128xf32>
    %c0_34 = arith.constant 0 : index
    %c0_35 = arith.constant 0 : index
    %57 = vector.load %arg11[%c0_34, %c0_35] : memref<8x128xf32, #tpu.memory_space<vmem>>, vector<8x128xf32>
    tpu.vector_store %arg11[%c0_34, %c0_35], %56 {strides = array<i32>} : memref<8x128xf32, #tpu.memory_space<vmem>>, vector<8x128xf32>,
    %c0_36 = arith.constant 0 : index
    %c0_37 = arith.constant 0 : index
    %58 = vector.load %arg12[%c0_36, %c0_37] : memref<8x128xf32, #tpu.memory_space<vmem>>, vector<8x128xf32>
    tpu.vector_store %arg12[%c0_36, %c0_37], %26 {strides = array<i32>} : memref<8x128xf32, #tpu.memory_space<vmem>>, vector<8x128xf32>,
    %c0_38 = arith.constant 0 : index
    %c0_39 = arith.constant 0 : index
    %59 = vector.load %arg13[%c0_38, %c0_39] : memref<8x128xf32, #tpu.memory_space<vmem>>, vector<8x128xf32>
    tpu.vector_store %arg13[%c0_38, %c0_39], %27 {strides = array<i32>} : memref<8x128xf32, #tpu.memory_space<vmem>>, vector<8x128xf32>,
    return
  }
  func.func @transform_0(%arg0: i32) -> (i32, i32) {
    %c0_i32 = arith.constant 0 : i32
    %c0_i32_0 = arith.constant 0 : i32
    return %arg0, %c0_i32 : i32, i32
  }
  func.func @transform_1(%arg0: i32) -> (i32, i32) {
    %c0_i32 = arith.constant 0 : i32
    %c0_i32_0 = arith.constant 0 : i32
    return %arg0, %c0_i32 : i32, i32
  }
  func.func @transform_2(%arg0: i32) -> (i32, i32) {
    %c0_i32 = arith.constant 0 : i32
    %c0_i32_0 = arith.constant 0 : i32
    return %arg0, %c0_i32 : i32, i32
  }
  func.func @transform_3(%arg0: i32) -> (i32, i32) {
    %c0_i32 = arith.constant 0 : i32
    %c0_i32_0 = arith.constant 0 : i32
    %c0_i32_1 = arith.constant 0 : i32
    return %c0_i32, %c0_i32_0 : i32, i32
  }
  func.func @transform_4(%arg0: i32) -> (i32, i32) {
    %c0_i32 = arith.constant 0 : i32
    %c0_i32_0 = arith.constant 0 : i32
    %c0_i32_1 = arith.constant 0 : i32
    return %c0_i32, %c0_i32_0 : i32, i32
  }
  func.func @transform_5(%arg0: i32) -> (i32, i32) {
    %c0_i32 = arith.constant 0 : i32
    %c0_i32_0 = arith.constant 0 : i32
    %c0_i32_1 = arith.constant 0 : i32
    return %c0_i32, %c0_i32_0 : i32, i32
  }
  func.func @transform_6(%arg0: i32) -> (i32, i32) {
    %c0_i32 = arith.constant 0 : i32
    %c0_i32_0 = arith.constant 0 : i32
    %c0_i32_1 = arith.constant 0 : i32
    return %c0_i32, %c0_i32_0 : i32, i32
  }
  func.func @transform_7(%arg0: i32) -> (i32, i32) {
    %c0_i32 = arith.constant 0 : i32
    %c0_i32_0 = arith.constant 0 : i32
    %c0_i32_1 = arith.constant 0 : i32
    return %c0_i32, %c0_i32_0 : i32, i32
  }
  func.func @transform_8(%arg0: i32) -> (i32, i32) {
    %c0_i32 = arith.constant 0 : i32
    %c0_i32_0 = arith.constant 0 : i32
    %c0_i32_1 = arith.constant 0 : i32
    return %c0_i32, %c0_i32_0 : i32, i32
  }
  func.func @transform_9(%arg0: i32) -> (i32, i32) {
    %c0_i32 = arith.constant 0 : i32
    %c0_i32_0 = arith.constant 0 : i32
    %c0_i32_1 = arith.constant 0 : i32
    return %c0_i32, %c0_i32_0 : i32, i32
  }
  func.func @transform_10(%arg0: i32) -> (i32, i32) {
    %c0_i32 = arith.constant 0 : i32
    %c0_i32_0 = arith.constant 0 : i32
    return %arg0, %c0_i32 : i32, i32
  }
  func.func @transform_11(%arg0: i32) -> (i32, i32) {
    %c0_i32 = arith.constant 0 : i32
    %c0_i32_0 = arith.constant 0 : i32
    return %arg0, %c0_i32 : i32, i32
  }
  func.func @transform_12(%arg0: i32) -> (i32, i32) {
    %c0_i32 = arith.constant 0 : i32
    %c0_i32_0 = arith.constant 0 : i32
    return %arg0, %c0_i32 : i32, i32
  }
}

</mosaic_0001>

<bundles_post_ra>
// kernel: _lambda_.1
= control target key start
LH: loop header
LB: loop body
LE: loop exit
PB: predicated region body
PF: predicated region fallthrough
CT: control target
= control target key end

     0   :  { %18 = vsyncpa [#allocation3], 0  ;;  %s1157_s0 = inlined_call_operand.vmem [shape: f32[8,128], index: 0, kind: input, shape index: {}]   ;;  %s1158_s1 = inlined_call_operand.vmem [shape: f32[8,128], index: 1, kind: input, shape index: {}]   ;;  %s1159_s2 = inlined_call_operand.vmem [shape: f32[8,128], index: 2, kind: input, shape index: {}]   ;;  %s1160_s3 = inlined_call_operand.hbm [shape: f32[128,896], index: 3, kind: input, shape index: {}]   ;;  %s1161_s4 = inlined_call_operand.hbm [shape: f32[128,128], index: 4, kind: input, shape index: {}]   ;;  %s1162_s5 = inlined_call_operand.hbm [shape: f32[128,128], index: 5, kind: input, shape index: {}]   ;;  %s1163_s6 = inlined_call_operand.hbm [shape: f32[128,256], index: 6, kind: input, shape index: {}]   ;;  %s1164_s7 = inlined_call_operand.hbm [shape: f32[128,128], index: 7, kind: input, shape index: {}]   ;;  %s1165_s8 = inlined_call_operand.hbm [shape: f32[128,128], index: 8, kind: input, shape index: {}]   ;;  %s1166_s9 = inlined_call_operand.vmem [shape: f32[128,128], index: 9, kind: input, shape index: {}]   ;;  %s1167_s10 = inlined_call_operand.hbm [shape: f32[8,128], index: 10, kind: output, shape index: {0}]   ;;  %s1168_s11 = inlined_call_operand.hbm [shape: f32[8,128], index: 11, kind: output, shape index: {1}]   ;;  %s1169_s12 = inlined_call_operand.hbm [shape: f32[8,128], index: 12, kind: output, shape index: {2}]  }
   0x1   :  { %19 = vsyncpa [#allocation6], 0 }
   0x2   :  { %20 = vsyncpa [#allocation9], 0 }
   0x3   :  { %21 = vsyncpa [#allocation12], 0 }
   0x4   :  { %22 = vsyncpa [#allocation4], 0  ;;  %s47_s23 = sshll.u32 %s1161_s4, 4  ;;  %s48_s23 = int_to_ptr.hbm [resolvable:$true] %s47_s23 }
   0x5   :  { %23 = vsyncpa [#allocation15], 0  ;;  %s960_s24 = smov [#allocation5]   ;;  %s73_s28 = sshll.u32 %s1163_s6, 4  ;;  %s74_s28 = int_to_ptr.hbm [resolvable:$true] %s73_s28 }
   0x6   :  { %s49_s25 = sshll.u32 %s960_s24, 4  ;;  %s961_s29 = smov 128   ;;  %s50_s25 = int_to_ptr.vmem [resolvable:$true] %s49_s25 }
   0x7   :  { %s962_s30 = smov 8   ;;  %s963_s13 = smov [#allocation8]  }
   0x8   :  { %55 = dma.hbm_to_vmem [thread:$0]  %s48_s23, 2048, %s50_s25, [#allocation6], %s961_s29, %s961_s29, %s962_s30  }
   0x9   :  { %s75_s14 = sshll.u32 %s963_s13, 4  ;;  %s964_s4 = smov 256   ;;  %s76_s14 = int_to_ptr.vmem [resolvable:$true] %s75_s14 }
   0xa   :  { %s965_s15 = smov 16   ;;  %s34_s18 = sshll.u32 %s1160_s3, 4  ;;  %s35_s18 = int_to_ptr.hbm [resolvable:$true] %s34_s18 }
   0xb   :  { %81 = dma.hbm_to_vmem [thread:$0]  %s74_s28, 4096, %s76_s14, [#allocation9], %s964_s4, %s964_s4, %s965_s15  }
   0xc   :  { %s966_s19 = smov [#allocation2]   ;;  %s60_s22 = sshll.u32 %s1162_s5, 4  ;;  %s61_s22 = int_to_ptr.hbm [resolvable:$true] %s60_s22 }
   0xd   :  { %s36_s6 = sshll.u32 %s966_s19, 4  ;;  %s967_s23 = smov 896   ;;  %s37_s6 = int_to_ptr.vmem [resolvable:$true] %s36_s6 }
   0xe   :  { %s968_s24 = smov 56   ;;  %s969_s25 = smov [#allocation7]  }
   0xf   :  { %42 = dma.hbm_to_vmem [thread:$0]  %s35_s18, 14336, %s37_s6, [#allocation3], %s967_s23, %s967_s23, %s968_s24  }
  0x10   :  { %s62_s26 = sshll.u32 %s969_s25, 4  ;;  %s86_s13 = sshll.u32 %s1164_s7, 4  ;;  %s63_s26 = int_to_ptr.vmem [resolvable:$true] %s62_s26  ;;  %s87_s13 = int_to_ptr.hbm [resolvable:$true] %s86_s13 }
  0x11   :  { %68 = dma.hbm_to_vmem [thread:$0]  %s61_s22, 2048, %s63_s26, [#allocation6], %s961_s29, %s961_s29, %s962_s30  }
  0x12   :  { %s99_s5 = sshll.u32 %s1165_s8, 4  ;;  %s970_s4 = smov [#allocation10]   ;;  %s100_s5 = int_to_ptr.hbm [resolvable:$true] %s99_s5 }
  0x13   :  { %s88_s15 = sshll.u32 %s970_s4, 4  ;;  %s971_s16 = smov [#allocation11]   ;;  %s89_s15 = int_to_ptr.vmem [resolvable:$true] %s88_s15 }
  0x14   :  { %94 = dma.hbm_to_vmem [thread:$0]  %s87_s13, 2048, %s89_s15, [#allocation9], %s961_s29, %s961_s29, %s962_s30  }
  0x15   :  { %s101_s7 = sshll.u32 %s971_s16, 4  ;;  %s102_s7 = int_to_ptr.vmem [resolvable:$true] %s101_s7 }
  0x16   :  { %107 = dma.hbm_to_vmem [thread:$0]  %s100_s5, 2048, %s102_s7, [#allocation12], %s961_s29, %s961_s29, %s962_s30  }
  0x17   :  { %948 = dma.done.wait [#allocation3], 14336  }
  0x18   :  { %949 = vsyncadd [#allocation3], 4294952960 }
  0x19   :  { %950 = dma.done.wait [#allocation6], 4096  }
  0x1a   :  { %951 = vsyncadd [#allocation6], 4294963200 }
  0x1b   :  { %952 = dma.done.wait [#allocation9], 6144  }
  0x1c   :  { %953 = vsyncadd [#allocation9], 4294961152 }
  0x1d   :  { %954 = dma.done.wait [#allocation12], 2048  }
  0x1e   :  { %955 = vsyncadd [#allocation12], 4294965248  ;;  %v243_v0 = vld [vmem:[#allocation2 + $0x360] sm:$0xff]  ;;  %v236_v1 = vld [vmem:[#allocation2 + $0x328] sm:$0xff]  ;;  %s972_s21 = smov [#allocation14]   ;;  %s680_s25 = sshll.u32 %s1168_s11, 4  ;;  %s681_s25 = int_to_ptr.hbm [resolvable:$true] %s680_s25 }
  0x1f   :  { %307 = vmatpush.msra.mxu3 %v243_v0  ;;  %v229_v2 = vld [vmem:[#allocation2 + $0x2f0] sm:$0xff]  ;;  %v222_v3 = vld [vmem:[#allocation2 + $0x2b8] sm:$0xff]  ;;  %v215_v4 = vld [vmem:[#allocation2 + $0x280] sm:$0xff]  ;;  %s678_s22 = sshll.u32 %s972_s21, 4  ;;  %s973_s26 = smov [#allocation16]   ;;  %s679_s22 = int_to_ptr.vmem [resolvable:$true] %s678_s22 }
  0x20   :  { %v240_v5 = vld [vmem:[#allocation2 + $0x348] sm:$0xff]  ;;  %v233_v6 = vld [vmem:[#allocation2 + $0x310] sm:$0xff]  ;;  %v226_v8 = vld [vmem:[#allocation2 + $0x2d8] sm:$0xff]  ;;  %s689_s27 = sshll.u32 %s973_s26, 4  ;;  %s691_s13 = sshll.u32 %s1169_s12, 4  ;;  %s690_s27 = int_to_ptr.vmem [resolvable:$true] %s689_s27  ;;  %s692_s13 = int_to_ptr.hbm [resolvable:$true] %s691_s13 }
  0x21   :  { %308 = vmatpush.msra.mxu3 %v236_v1  ;;  %247 = vmatpush.msra.mxu0 %v240_v5  ;;  %v208_v7 = vld [vmem:[#allocation2 + $0x248] sm:$0xff]  ;;  %v201_v9 = vld [vmem:[#allocation2 + $0x210] sm:$0xff]  ;;  %v219_v10 = vld [vmem:[#allocation2 + $0x2a0] sm:$0xff]  ;;  %s974_s3 = smov [#allocation13]   ;;  %s669_s4 = sshll.u32 %s1167_s10, 4  ;;  %s670_s4 = int_to_ptr.hbm [resolvable:$true] %s669_s4 }
  0x22   :  { %v194_v11 = vld [vmem:[#allocation2 + $0x1d8] sm:$0xff]  ;;  %v212_v12 = vld [vmem:[#allocation2 + $0x268] sm:$0xff]  ;;  %v187_v13 = vld [vmem:[#allocation2 + $0x1a0] sm:$0xff]  ;;  %s667_s14 = sshll.u32 %s974_s3, 4  ;;  %s668_s14 = int_to_ptr.vmem [resolvable:$true] %s667_s14 }
  0x23   :  { %309 = vmatpush.msra.mxu3 %v229_v2  ;;  %248 = vmatpush.msra.mxu0 %v233_v6  ;;  %v205_v14 = vld [vmem:[#allocation2 + $0x230] sm:$0xff]  ;;  %v180_v15 = vld [vmem:[#allocation2 + $0x168] sm:$0xff]  ;;  %v198_v16 = vld [vmem:[#allocation2 + $0x1f8] sm:$0xff] }
  0x24   :  { %v173_v17 = vld [vmem:[#allocation2 + $0x130] sm:$0xff]  ;;  %v191_v18 = vld [vmem:[#allocation2 + $0x1c0] sm:$0xff]  ;;  %v166_v19 = vld [vmem:[#allocation2 + $0xf8] sm:$0xff] }
  0x25   :  { %310 = vmatpush.msra.mxu3 %v222_v3  ;;  %249 = vmatpush.msra.mxu0 %v226_v8  ;;  %v184_v20 = vld [vmem:[#allocation2 + $0x188] sm:$0xff]  ;;  %v159_v21 = vld [vmem:[#allocation2 + $0xc0] sm:$0xff]  ;;  %v177_v22 = vld [vmem:[#allocation2 + $0x150] sm:$0xff] }
  0x26   :  { %v152_v23 = vld [vmem:[#allocation2 + $0x88] sm:$0xff]  ;;  %v170_v24 = vld [vmem:[#allocation2 + $0x118] sm:$0xff]  ;;  %v145_v25 = vld [vmem:[#allocation2 + $0x50] sm:$0xff] }
  0x27   :  { %311 = vmatpush.msra.mxu3 %v215_v4  ;;  %250 = vmatpush.msra.mxu0 %v219_v10  ;;  %v163_v26 = vld [vmem:[#allocation2 + $0xe0] sm:$0xff]  ;;  %v138_v27 = vld [vmem:[#allocation2 + $0x18] sm:$0xff]  ;;  %v156_v28 = vld [vmem:[#allocation2 + $0xa8] sm:$0xff] }
  0x28   :  { %v403_v29 = vld [vmem:[#allocation5 + $0x78] sm:$0xff]  ;;  %v1073_v30 = vld [vmem:[%s1157_s0] sm:$0xff]  ;;  %v402_v31 = vld [vmem:[#allocation5 + $0x70] sm:$0xff] }
  0x29   :  { %312 = vmatpush.msra.mxu3 %v208_v7  ;;  %251 = vmatpush.msra.mxu0 %v212_v12  ;;  %v149_v32 = vld [vmem:[#allocation2 + $0x70] sm:$0xff]  ;;  %v142_v33 = vld [vmem:[#allocation2 + $0x38] sm:$0xff]  ;;  %v401_v34 = vld [vmem:[#allocation5 + $0x68] sm:$0xff] }
  0x2a   :  { %v135_v35 = vld [vmem:[#allocation2] sm:$0xff]  ;;  %v244_v37 = vld [vmem:[#allocation2 + $0x368] sm:$0xff]  ;;  %v399_v38 = vld [vmem:[#allocation5 + $0x58] sm:$0xff] }
  0x2b   :  { %313 = vmatpush.msra.mxu3 %v201_v9  ;;  %252 = vmatpush.msra.mxu0 %v205_v14  ;;  %v400_v36 = vld [vmem:[#allocation5 + $0x60] sm:$0xff]  ;;  %v241_v39 = vld [vmem:[#allocation2 + $0x350] sm:$0xff]  ;;  %v234_v41 = vld [vmem:[#allocation2 + $0x318] sm:$0xff] }
  0x2c   :  { %v237_v40 = vld [vmem:[#allocation2 + $0x330] sm:$0xff]  ;;  %267 = vmatpush.msra.mxu1 %v241_v39  ;;  %v230_v43 = vld [vmem:[#allocation2 + $0x2f8] sm:$0xff]  ;;  %v227_v44 = vld [vmem:[#allocation2 + $0x2e0] sm:$0xff] }
  0x2d   :  { %314 = vmatpush.msra.mxu3 %v194_v11  ;;  %253 = vmatpush.msra.mxu0 %v198_v16  ;;  %v398_v42 = vld [vmem:[#allocation5 + $0x50] sm:$0xff]  ;;  %v397_v45 = vld [vmem:[#allocation5 + $0x48] sm:$0xff]  ;;  %v223_v46 = vld [vmem:[#allocation2 + $0x2c0] sm:$0xff] }
  0x2e   :  { %268 = vmatpush.msra.mxu1 %v234_v41  ;;  %v220_v47 = vld [vmem:[#allocation2 + $0x2a8] sm:$0xff]  ;;  %v396_v48 = vld [vmem:[#allocation5 + $0x40] sm:$0xff]  ;;  %v213_v50 = vld [vmem:[#allocation2 + $0x270] sm:$0xff] }
  0x2f   :  { %315 = vmatpush.msra.mxu3 %v187_v13  ;;  %254 = vmatpush.msra.mxu0 %v191_v18  ;;  %v216_v49 = vld [vmem:[#allocation2 + $0x288] sm:$0xff]  ;;  %v395_v51 = vld [vmem:[#allocation5 + $0x38] sm:$0xff]  ;;  %v209_v52 = vld [vmem:[#allocation2 + $0x250] sm:$0xff] }
  0x30   :  { %269 = vmatpush.msra.mxu1 %v227_v44  ;;  %v206_v53 = vld [vmem:[#allocation2 + $0x238] sm:$0xff]  ;;  %v394_v54 = vld [vmem:[#allocation5 + $0x30] sm:$0xff]  ;;  %v199_v56 = vld [vmem:[#allocation2 + $0x200] sm:$0xff] }
  0x31   :  { %316 = vmatpush.msra.mxu3 %v180_v15  ;;  %255 = vmatpush.msra.mxu0 %v184_v20  ;;  %v202_v55 = vld [vmem:[#allocation2 + $0x218] sm:$0xff]  ;;  %v393_v57 = vld [vmem:[#allocation5 + $0x28] sm:$0xff]  ;;  %v195_v58 = vld [vmem:[#allocation2 + $0x1e0] sm:$0xff] }
  0x32   :  { %270 = vmatpush.msra.mxu1 %v220_v47  ;;  %v192_v59 = vld [vmem:[#allocation2 + $0x1c8] sm:$0xff]  ;;  %v392_v60 = vld [vmem:[#allocation5 + $0x20] sm:$0xff]  ;;  %v185_v62 = vld [vmem:[#allocation2 + $0x190] sm:$0xff] }
  0x33   :  { %317 = vmatpush.msra.mxu3 %v173_v17  ;;  %256 = vmatpush.msra.mxu0 %v177_v22  ;;  %v188_v61 = vld [vmem:[#allocation2 + $0x1a8] sm:$0xff]  ;;  %v391_v63 = vld [vmem:[#allocation5 + $0x18] sm:$0xff]  ;;  %v181_v0 = vld [vmem:[#allocation2 + $0x170] sm:$0xff] }
  0x34   :  { %271 = vmatpush.msra.mxu1 %v213_v50  ;;  %v390_v1 = vld [vmem:[#allocation5 + $0x10] sm:$0xff]  ;;  %v174_v2 = vld [vmem:[#allocation2 + $0x138] sm:$0xff]  ;;  %v389_v3 = vld [vmem:[#allocation5 + $0x8] sm:$0xff] }
  0x35   :  { %318 = vmatpush.msra.mxu3 %v166_v19  ;;  %257 = vmatpush.msra.mxu0 %v170_v24  ;;  %v167_v4 = vld [vmem:[#allocation2 + $0x100] sm:$0xff]  ;;  %v160_v7 = vld [vmem:[#allocation2 + $0xc8] sm:$0xff]  ;;  %v153_v8 = vld [vmem:[#allocation2 + $0x90] sm:$0xff] }
  0x36   :  { %272 = vmatpush.msra.mxu1 %v206_v53  ;;  %v388_v5 = vld [vmem:[#allocation5] sm:$0xff]  ;;  %v146_v9 = vld [vmem:[#allocation2 + $0x58] sm:$0xff]  ;;  %v441_v12 = vld [vmem:[#allocation7 + $0x70] sm:$0xff] }
  0x37   :  { %319 = vmatpush.msra.mxu3 %v159_v21  ;;  %258 = vmatpush.msra.mxu0 %v163_v26  ;;  %v387_v6 = vld [vmem:[%s1158_s1] sm:$0xff]  ;;  %v442_v11 = vld [vmem:[#allocation7 + $0x78] sm:$0xff]  ;;  %v440_v13 = vld [vmem:[#allocation7 + $0x68] sm:$0xff] }
  0x38   :  { %273 = vmatpush.msra.mxu1 %v199_v56  ;;  %v139_v10 = vld [vmem:[#allocation2 + $0x20] sm:$0xff]  ;;  %v438_v15 = vld [vmem:[#allocation7 + $0x58] sm:$0xff]  ;;  %v437_v16 = vld [vmem:[#allocation7 + $0x50] sm:$0xff] }
  0x39   :  { %320 = vmatpush.msra.mxu3 %v152_v23  ;;  %259 = vmatpush.msra.mxu0 %v156_v28  ;;  %v439_v14 = vld [vmem:[#allocation7 + $0x60] sm:$0xff]  ;;  %v436_v17 = vld [vmem:[#allocation7 + $0x48] sm:$0xff]  ;;  %v434_v19 = vld [vmem:[#allocation7 + $0x38] sm:$0xff] }
  0x3a   :  { %274 = vmatpush.msra.mxu1 %v192_v59  ;;  %v435_v18 = vld [vmem:[#allocation7 + $0x40] sm:$0xff]  ;;  %v178_v20 = vld [vmem:[#allocation2 + $0x158] sm:$0xff]  ;;  %v433_v21 = vld [vmem:[#allocation7 + $0x30] sm:$0xff] }
  0x3b   :  { %321 = vmatpush.msra.mxu3 %v145_v25  ;;  %260 = vmatpush.msra.mxu0 %v149_v32  ;;  %v171_v22 = vld [vmem:[#allocation2 + $0x120] sm:$0xff]  ;;  %v432_v23 = vld [vmem:[#allocation7 + $0x28] sm:$0xff]  ;;  %v157_v26 = vld [vmem:[#allocation2 + $0xb0] sm:$0xff] }
  0x3c   :  { %275 = vmatpush.msra.mxu1 %v185_v62  ;;  %v164_v24 = vld [vmem:[#allocation2 + $0xe8] sm:$0xff]  ;;  %v431_v25 = vld [vmem:[#allocation7 + $0x20] sm:$0xff]  ;;  %v150_v28 = vld [vmem:[#allocation2 + $0x78] sm:$0xff] }
  0x3d   :  { %322 = vmatpush.msra.mxu3 %v138_v27  ;;  %261 = vmatpush.msra.mxu0 %v142_v33  ;;  %v430_v27 = vld [vmem:[#allocation7 + $0x18] sm:$0xff]  ;;  %v428_v32 = vld [vmem:[#allocation7 + $0x8] sm:$0xff]  ;;  %v245_v39 = vld [vmem:[#allocation2 + $0x370] sm:$0xff] }
  0x3e   :  { %323 = vmatmul.f32.vlgmr.msra.gmra.mxu3 %v1073_v30  ;;  %276 = vmatpush.msra.mxu1 %v178_v20  ;;  %v136_v33 = vld [vmem:[#allocation2 + $0x8] sm:$0xff]  ;;  %v238_v41 = vld [vmem:[#allocation2 + $0x338] sm:$0xff]  ;;  %v193_v47 = vld [vmem:[#allocation2 + $0x1d0] sm:$0xff] }
  0x3f   :  { %404 = vmatpush.msrb.mxu3 %v403_v29  ;;  %262 = vmatpush.msra.mxu0 %v135_v35  ;;  %v429_v29 = vld [vmem:[#allocation7 + $0x10] sm:$0xff]  ;;  %v242_v35 = vld [vmem:[#allocation2 + $0x358] sm:$0xff]  ;;  %v224_v44 = vld [vmem:[#allocation2 + $0x2c8] sm:$0xff] }
  0x40   :  { %263 = vmatmul.f32.vlgmr.msra.gmra.mxu0 %v1073_v30  ;;  %277 = vmatpush.msra.mxu1 %v171_v22  ;;  %v203_v50 = vld [vmem:[#allocation2 + $0x220] sm:$0xff]  ;;  %v196_v53 = vld [vmem:[#allocation2 + $0x1e8] sm:$0xff]  ;;  %v165_v56 = vld [vmem:[#allocation2 + $0xf0] sm:$0xff] }
  0x41   :  { %405 = vmatpush.msrb.mxu3 %v402_v31  ;;  %327 = vmatpush.msrb.mxu0 %v244_v37  ;;  %v143_v31 = vld [vmem:[#allocation2 + $0x40] sm:$0xff]  ;;  %v228_v37 = vld [vmem:[#allocation2 + $0x2e8] sm:$0xff]  ;;  %v197_v20 = vld [vmem:[#allocation2 + $0x1f0] sm:$0xff] }
  0x42   :  { %278 = vmatpush.msra.mxu1 %v164_v24  ;;  %287 = vmatpush.msra.mxu2 %v242_v35  ;;  %v175_v59 = vld [vmem:[#allocation2 + $0x140] sm:$0xff]  ;;  %v168_v62 = vld [vmem:[#allocation2 + $0x108] sm:$0xff]  ;;  %v190_v22 = vld [vmem:[#allocation2 + $0x1b8] sm:$0xff] }
  0x43   :  { %406 = vmatpush.msrb.mxu3 %v401_v34  ;;  %328 = vmatpush.msrb.mxu0 %v237_v40  ;;  %v427_v34 = vld [vmem:[#allocation7] sm:$0xff]  ;;  %v214_v40 = vld [vmem:[#allocation2 + $0x278] sm:$0xff]  ;;  %v148_v35 = vld [vmem:[#allocation2 + $0x68] sm:$0xff] }
  0x44   :  { %279 = vmatpush.msra.mxu1 %v157_v26  ;;  %v183_v24 = vld [vmem:[#allocation2 + $0x180] sm:$0xff]  ;;  %v176_v26 = vld [vmem:[#allocation2 + $0x148] sm:$0xff] }
  0x45   :  { %407 = vmatpush.msrb.mxu3 %v400_v36  ;;  %329 = vmatpush.msrb.mxu0 %v230_v43  ;;  %v235_v36 = vld [vmem:[#allocation2 + $0x320] sm:$0xff] }
  0x46   :  { %280 = vmatpush.msra.mxu1 %v150_v28  ;;  %288 = vmatpush.msra.mxu2 %v235_v36  ;;  %v207_v43 = vld [vmem:[#allocation2 + $0x240] sm:$0xff]  ;;  %v169_v28 = vld [vmem:[#allocation2 + $0x110] sm:$0xff] }
  0x47   :  { %408 = vmatpush.msrb.mxu3 %v399_v38  ;;  %330 = vmatpush.msrb.mxu0 %v223_v46  ;;  %v221_v38 = vld [vmem:[#allocation2 + $0x2b0] sm:$0xff]  ;;  %v474_v36 = vld [vmem:[#allocation8 + $0x40] sm:$0xff] }
  0x48   :  { %281 = vmatpush.msra.mxu1 %v143_v31  ;;  %289 = vmatpush.msra.mxu2 %v228_v37  ;;  %v217_v46 = vld [vmem:[#allocation2 + $0x290] sm:$0xff]  ;;  %v162_v31 = vld [vmem:[#allocation2 + $0xd8] sm:$0xff] }
  0x49   :  { %409 = vmatpush.msrb.mxu3 %v398_v42  ;;  %331 = vmatpush.msrb.mxu0 %v216_v49  ;;  %v231_v42 = vld [vmem:[#allocation2 + $0x300] sm:$0xff]  ;;  %v186_v49 = vld [vmem:[#allocation2 + $0x198] sm:$0xff]  ;;  %v141_v37 = vld [vmem:[#allocation2 + $0x30] sm:$0xff] }
  0x4a   :  { %282 = vmatpush.msra.mxu1 %v136_v33  ;;  %290 = vmatpush.msra.mxu2 %v221_v38  ;;  %v155_v33 = vld [vmem:[#allocation2 + $0xa0] sm:$0xff]  ;;  %v472_v38 = vld [vmem:[#allocation8 + $0x30] sm:$0xff] }
  0x4b   :  { %410 = vmatpush.msrb.mxu3 %v397_v45  ;;  %332 = vmatpush.msrb.mxu0 %v209_v52  ;;  %v200_v45 = vld [vmem:[#allocation2 + $0x208] sm:$0xff]  ;;  %v179_v52 = vld [vmem:[#allocation2 + $0x160] sm:$0xff] }
  0x4c   :  { %283 = vmatmul.f32.vlgmr.msra.gmra.mxu1 %v1073_v30  ;;  %291 = vmatpush.msra.mxu2 %v214_v40  ;;  %v495_v40 = vld [vmem:[#allocation8 + $0xe8] sm:$0xff] }
  0x4d   :  { %411 = vmatpush.msrb.mxu3 %v396_v48  ;;  %333 = vmatpush.msrb.mxu0 %v202_v55  ;;  %v210_v48 = vld [vmem:[#allocation2 + $0x258] sm:$0xff]  ;;  %v189_v55 = vld [vmem:[#allocation2 + $0x1b0] sm:$0xff] }
  0x4e   :  { %347 = vmatpush.msrb.mxu1 %v245_v39  ;;  %292 = vmatpush.msra.mxu2 %v207_v43  ;;  %v497_v39 = vld [vmem:[#allocation8 + $0xf8] sm:$0xff] }
  0x4f   :  { %412 = vmatpush.msrb.mxu3 %v395_v51  ;;  %334 = vmatpush.msrb.mxu0 %v195_v58  ;;  %v158_v58 = vld [vmem:[#allocation2 + $0xb8] sm:$0xff] }
  0x50   :  { %348 = vmatpush.msrb.mxu1 %v238_v41  ;;  %293 = vmatpush.msra.mxu2 %v200_v45  ;;  %v493_v41 = vld [vmem:[#allocation8 + $0xd8] sm:$0xff] }
  0x51   :  { %413 = vmatpush.msrb.mxu3 %v394_v54  ;;  %335 = vmatpush.msrb.mxu0 %v188_v61  ;;  %v172_v54 = vld [vmem:[#allocation2 + $0x128] sm:$0xff]  ;;  %v151_v61 = vld [vmem:[#allocation2 + $0x80] sm:$0xff]  ;;  %v489_v43 = vld [vmem:[#allocation8 + $0xb8] sm:$0xff] }
  0x52   :  { %349 = vmatpush.msrb.mxu1 %v231_v42  ;;  %294 = vmatpush.msra.mxu2 %v193_v47  ;;  %v491_v42 = vld [vmem:[#allocation8 + $0xc8] sm:$0xff]  ;;  %v485_v45 = vld [vmem:[#allocation8 + $0x98] sm:$0xff] }
  0x53   :  { %414 = vmatpush.msrb.mxu3 %v393_v57  ;;  %336 = vmatpush.msrb.mxu0 %v181_v0  ;;  %v182_v57 = vld [vmem:[#allocation2 + $0x178] sm:$0xff]  ;;  %v144_v0 = vld [vmem:[#allocation2 + $0x48] sm:$0xff] }
  0x54   :  { %350 = vmatpush.msrb.mxu1 %v224_v44  ;;  %295 = vmatpush.msra.mxu2 %v186_v49  ;;  %v487_v44 = vld [vmem:[#allocation8 + $0xa8] sm:$0xff]  ;;  %v481_v47 = vld [vmem:[#allocation8 + $0x78] sm:$0xff] }
  0x55   :  { %415 = vmatpush.msrb.mxu3 %v392_v60  ;;  %337 = vmatpush.msrb.mxu0 %v174_v2  ;;  %v161_v2 = vld [vmem:[#allocation2 + $0xd0] sm:$0xff]  ;;  %v477_v49 = vld [vmem:[#allocation8 + $0x58] sm:$0xff] }
  0x56   :  { %351 = vmatpush.msrb.mxu1 %v217_v46  ;;  %296 = vmatpush.msra.mxu2 %v179_v52  ;;  %v483_v46 = vld [vmem:[#allocation8 + $0x88] sm:$0xff]  ;;  %v470_v52 = vld [vmem:[#allocation8 + $0x20] sm:$0xff] }
  0x57   :  { %416 = vmatpush.msrb.mxu3 %v391_v63  ;;  %338 = vmatpush.msrb.mxu0 %v167_v4 }
  0x58   :  { %352 = vmatpush.msrb.mxu1 %v210_v48  ;;  %297 = vmatpush.msra.mxu2 %v172_v54  ;;  %v479_v48 = vld [vmem:[#allocation8 + $0x68] sm:$0xff]  ;;  %v468_v54 = vld [vmem:[#allocation8 + $0x10] sm:$0xff] }
  0x59   :  { %417 = vmatpush.msrb.mxu3 %v390_v1  ;;  %339 = vmatpush.msrb.mxu0 %v160_v7 }
  0x5a   :  { %353 = vmatpush.msrb.mxu1 %v203_v50  ;;  %298 = vmatpush.msra.mxu2 %v165_v56  ;;  %v475_v50 = vld [vmem:[#allocation8 + $0x48] sm:$0xff]  ;;  %v466_v56 = vld [vmem:[#allocation8] sm:$0xff] }
  0x5b   :  { %418 = vmatpush.msrb.mxu3 %v389_v3  ;;  %340 = vmatpush.msrb.mxu0 %v153_v8  ;;  %v137_v3 = vld [vmem:[#allocation2 + $0x10] sm:$0xff]  ;;  %v239_v8 = vld [vmem:[#allocation2 + $0x340] sm:$0xff] }
  0x5c   :  { %354 = vmatpush.msrb.mxu1 %v196_v53  ;;  %299 = vmatpush.msra.mxu2 %v158_v58  ;;  %v471_v53 = vld [vmem:[#allocation8 + $0x28] sm:$0xff]  ;;  %v559_v58 = vld [vmem:[#allocation10 + $0x78] sm:$0xff] }
  0x5d   :  { %419 = vmatpush.msrb.mxu3 %v388_v5  ;;  %341 = vmatpush.msrb.mxu0 %v146_v9  ;;  %v246_v5 = vld [vmem:[#allocation2 + $0x378] sm:$0xff]  ;;  %v147_v9 = vld [vmem:[#allocation2 + $0x60] sm:$0xff] }
  0x5e   :  { %420 = vmatmul.f32.vlgmr.msrb.gmra.mxu3 %v387_v6  ;;  %355 = vmatpush.msrb.mxu1 %v189_v55  ;;  %v154_v6 = vld [vmem:[#allocation2 + $0x98] sm:$0xff] }
  0x5f   :  { %342 = vmatpush.msrb.mxu0 %v139_v10  ;;  %300 = vmatpush.msra.mxu2 %v151_v61  ;;  %v232_v10 = vld [vmem:[#allocation2 + $0x308] sm:$0xff]  ;;  %v469_v55 = vld [vmem:[#allocation8 + $0x18] sm:$0xff] }
  0x60   :  { %343 = vmatmul.f32.vlgmr.msrb.gmra.mxu0 %v1073_v30  ;;  %356 = vmatpush.msrb.mxu1 %v182_v57  ;;  %v467_v57 = vld [vmem:[#allocation8 + $0x8] sm:$0xff] }
  0x61   :  { %443 = vmatpush.msra.mxu0 %v442_v11  ;;  %301 = vmatpush.msra.mxu2 %v144_v0  ;;  %v140_v11 = vld [vmem:[#allocation2 + $0x28] sm:$0xff] }
  0x62   :  { %357 = vmatpush.msrb.mxu1 %v175_v59  ;;  %v558_v59 = vld [vmem:[#allocation10 + $0x70] sm:$0xff]  ;;  %560 = vmatpush.msra.mxu3 %v559_v58 }
  0x63   :  { %444 = vmatpush.msra.mxu0 %v441_v12  ;;  %302 = vmatpush.msra.mxu2 %v137_v3  ;;  %v225_v12 = vld [vmem:[#allocation2 + $0x2d0] sm:$0xff]  ;;  %v556_v3 = vld [vmem:[#allocation10 + $0x60] sm:$0xff] }
  0x64   :  { %358 = vmatpush.msrb.mxu1 %v168_v62  ;;  %303 = vmatmul.f32.vlgmr.msra.gmra.mxu2 %v1073_v30 }
  0x65   :  { %445 = vmatpush.msra.mxu0 %v440_v13  ;;  %367 = vmatpush.msrb.mxu2 %v246_v5  ;;  %v496_v13 = vld [vmem:[#allocation8 + $0xf0] sm:$0xff] }
  0x66   :  { %359 = vmatpush.msrb.mxu1 %v161_v2  ;;  %561 = vmatpush.msra.mxu3 %v558_v59  ;;  %v554_v5 = vld [vmem:[#allocation10 + $0x50] sm:$0xff] }
  0x67   :  { %446 = vmatpush.msra.mxu0 %v439_v14  ;;  %368 = vmatpush.msrb.mxu2 %v239_v8  ;;  %v218_v14 = vld [vmem:[#allocation2 + $0x298] sm:$0xff] }
  0x68   :  { %360 = vmatpush.msrb.mxu1 %v154_v6  ;;  %v553_v6 = vld [vmem:[#allocation10 + $0x48] sm:$0xff]  ;;  %v551_v8 = vld [vmem:[#allocation10 + $0x38] sm:$0xff] }
  0x69   :  { %447 = vmatpush.msra.mxu0 %v438_v15  ;;  %369 = vmatpush.msrb.mxu2 %v232_v10  ;;  %v494_v15 = vld [vmem:[#allocation8 + $0xe0] sm:$0xff]  ;;  %v549_v10 = vld [vmem:[#allocation10 + $0x28] sm:$0xff] }
  0x6a   :  { %361 = vmatpush.msrb.mxu1 %v147_v9  ;;  %v550_v9 = vld [vmem:[#allocation10 + $0x30] sm:$0xff] }
  0x6b   :  { %448 = vmatpush.msra.mxu0 %v437_v16  ;;  %370 = vmatpush.msrb.mxu2 %v225_v12  ;;  %v211_v16 = vld [vmem:[#allocation2 + $0x260] sm:$0xff]  ;;  %v547_v12 = vld [vmem:[#allocation10 + $0x18] sm:$0xff] }
  0x6c   :  { %362 = vmatpush.msrb.mxu1 %v140_v11  ;;  %v548_v11 = vld [vmem:[#allocation10 + $0x20] sm:$0xff] }
  0x6d   :  { %449 = vmatpush.msra.mxu0 %v436_v17  ;;  %v492_v17 = vld [vmem:[#allocation8 + $0xd0] sm:$0xff]  ;;  %363 = vmatmul.f32.vlgmr.msrb.gmra.mxu1 %v1073_v30 }
  0x6e   :  { %498 = vmatpush.msra.mxu1 %v496_v13  ;;  %371 = vmatpush.msrb.mxu2 %v218_v14  ;;  %v546_v13 = vld [vmem:[#allocation10 + $0x10] sm:$0xff]  ;;  %v545_v14 = vld [vmem:[#allocation10 + $0x8] sm:$0xff] }
  0x6f   :  { %450 = vmatpush.msra.mxu0 %v435_v18  ;;  %v204_v18 = vld [vmem:[#allocation2 + $0x228] sm:$0xff] }
  0x70   :  { %499 = vmatpush.msra.mxu1 %v494_v15  ;;  %372 = vmatpush.msrb.mxu2 %v211_v16  ;;  %v544_v16 = vld [vmem:[#allocation10] sm:$0xff] }
  0x71   :  { %451 = vmatpush.msra.mxu0 %v434_v19  ;;  %v490_v19 = vld [vmem:[#allocation8 + $0xc0] sm:$0xff] }
  0x72   :  { %500 = vmatpush.msra.mxu1 %v492_v17  ;;  %373 = vmatpush.msrb.mxu2 %v204_v18  ;;  %v598_v18 = vld [vmem:[#allocation11 + $0x78] sm:$0xff] }
  0x73   :  { %452 = vmatpush.msra.mxu0 %v433_v21  ;;  %v488_v21 = vld [vmem:[#allocation8 + $0xb0] sm:$0xff] }
  0x74   :  { %501 = vmatpush.msra.mxu1 %v490_v19  ;;  %374 = vmatpush.msrb.mxu2 %v197_v20  ;;  %v597_v19 = vld [vmem:[#allocation11 + $0x70] sm:$0xff]  ;;  %v596_v20 = vld [vmem:[#allocation11 + $0x68] sm:$0xff] }
  0x75   :  { %453 = vmatpush.msra.mxu0 %v432_v23  ;;  %v486_v23 = vld [vmem:[#allocation8 + $0xa0] sm:$0xff] }
  0x76   :  { %502 = vmatpush.msra.mxu1 %v488_v21  ;;  %375 = vmatpush.msrb.mxu2 %v190_v22  ;;  %v595_v22 = vld [vmem:[#allocation11 + $0x60] sm:$0xff] }
  0x77   :  { %454 = vmatpush.msra.mxu0 %v431_v25  ;;  %v484_v25 = vld [vmem:[#allocation8 + $0x90] sm:$0xff] }
  0x78   :  { %503 = vmatpush.msra.mxu1 %v486_v23  ;;  %376 = vmatpush.msrb.mxu2 %v183_v24  ;;  %v594_v23 = vld [vmem:[#allocation11 + $0x58] sm:$0xff] }
  0x79   :  { %455 = vmatpush.msra.mxu0 %v430_v27  ;;  %v482_v27 = vld [vmem:[#allocation8 + $0x80] sm:$0xff] }
  0x7a   :  { %504 = vmatpush.msra.mxu1 %v484_v25  ;;  %377 = vmatpush.msrb.mxu2 %v176_v26  ;;  %v593_v25 = vld [vmem:[#allocation11 + $0x50] sm:$0xff] }
  0x7b   :  { %456 = vmatpush.msra.mxu0 %v429_v29  ;;  %v480_v29 = vld [vmem:[#allocation8 + $0x70] sm:$0xff] }
  0x7c   :  { %505 = vmatpush.msra.mxu1 %v482_v27  ;;  %378 = vmatpush.msrb.mxu2 %v169_v28  ;;  %v592_v27 = vld [vmem:[#allocation11 + $0x48] sm:$0xff]  ;;  %v591_v28 = vld [vmem:[#allocation11 + $0x40] sm:$0xff] }
  0x7d   :  { %457 = vmatpush.msra.mxu0 %v428_v32  ;;  %v478_v32 = vld [vmem:[#allocation8 + $0x60] sm:$0xff] }
  0x7e   :  { %506 = vmatpush.msra.mxu1 %v480_v29  ;;  %379 = vmatpush.msrb.mxu2 %v162_v31  ;;  %v590_v31 = vld [vmem:[#allocation11 + $0x38] sm:$0xff] }
  0x7f   :  { %458 = vmatpush.msra.mxu0 %v427_v34  ;;  %v476_v34 = vld [vmem:[#allocation8 + $0x50] sm:$0xff] }
  0x80   :  { %507 = vmatpush.msra.mxu1 %v478_v32  ;;  %380 = vmatpush.msrb.mxu2 %v155_v33  ;;  %v589_v33 = vld [vmem:[#allocation11 + $0x30] sm:$0xff] }
  0x81   :  { %599 = vmatpush.msrb.mxu0 %v598_v18 }
  0x82   :  { %508 = vmatpush.msra.mxu1 %v476_v34  ;;  %381 = vmatpush.msrb.mxu2 %v148_v35  ;;  %v588_v35 = vld [vmem:[#allocation11 + $0x28] sm:$0xff] }
  0x83   :  { %600 = vmatpush.msrb.mxu0 %v597_v19 }
  0x84   :  { %509 = vmatpush.msra.mxu1 %v474_v36  ;;  %382 = vmatpush.msrb.mxu2 %v141_v37  ;;  %v587_v37 = vld [vmem:[#allocation11 + $0x20] sm:$0xff] }
  0x85   :  { %383 = vmatmul.f32.vlgmr.msrb.gmra.mxu2 %v1073_v30  ;;  %v473_v30 = vld [vmem:[#allocation8 + $0x38] sm:$0xff]  ;;  %601 = vmatpush.msrb.mxu0 %v596_v20 }
  0x86   :  { %510 = vmatpush.msra.mxu1 %v472_v38  ;;  %518 = vmatpush.msra.mxu2 %v497_v39  ;;  %v586_v38 = vld [vmem:[#allocation11 + $0x18] sm:$0xff]  ;;  %v538_v39 = vld [vmem:[%s1159_s2] sm:$0xff] }
  0x87   :  { %602 = vmatpush.msrb.mxu0 %v595_v22 }
  0x88   :  { %519 = vmatpush.msra.mxu2 %v495_v40  ;;  %511 = vmatpush.msra.mxu1 %v470_v52  ;;  %v630_v52 = vld [vmem:[%s1166_s9 + $0x40] sm:$0xff] }
  0x89   :  { %603 = vmatpush.msrb.mxu0 %v594_v23 }
  0x8a   :  { %520 = vmatpush.msra.mxu2 %v493_v41  ;;  %512 = vmatpush.msra.mxu1 %v468_v54  ;;  %v628_v54 = vld [vmem:[%s1166_s9 + $0x30] sm:$0xff] }
  0x8b   :  { %604 = vmatpush.msrb.mxu0 %v593_v25 }
  0x8c   :  { %521 = vmatpush.msra.mxu2 %v491_v42  ;;  %513 = vmatpush.msra.mxu1 %v466_v56  ;;  %v585_v42 = vld [vmem:[#allocation11 + $0x10] sm:$0xff]  ;;  %v626_v56 = vld [vmem:[%s1166_s9 + $0x20] sm:$0xff] }
  0x8d   :  { %605 = vmatpush.msrb.mxu0 %v592_v27 }
  0x8e   :  { %522 = vmatpush.msra.mxu2 %v489_v43  ;;  %v584_v43 = vld [vmem:[#allocation11 + $0x8] sm:$0xff] }
  0x8f   :  { %606 = vmatpush.msrb.mxu0 %v591_v28 }
  0x90   :  { %523 = vmatpush.msra.mxu2 %v487_v44  ;;  %v583_v44 = vld [vmem:[#allocation11] sm:$0xff] }
  0x91   :  { %607 = vmatpush.msrb.mxu0 %v590_v31 }
  0x92   :  { %524 = vmatpush.msra.mxu2 %v485_v45  ;;  %v637_v45 = vld [vmem:[%s1166_s9 + $0x78] sm:$0xff] }
  0x93   :  { %608 = vmatpush.msrb.mxu0 %v589_v33  ;;  %638 = vmatpush.msrb.mxu1 %v637_v45 }
  0x94   :  { %525 = vmatpush.msra.mxu2 %v483_v46  ;;  %v636_v46 = vld [vmem:[%s1166_s9 + $0x70] sm:$0xff] }
  0x95   :  { %609 = vmatpush.msrb.mxu0 %v588_v35  ;;  %639 = vmatpush.msrb.mxu1 %v636_v46 }
  0x96   :  { %526 = vmatpush.msra.mxu2 %v481_v47  ;;  %v635_v47 = vld [vmem:[%s1166_s9 + $0x68] sm:$0xff] }
  0x97   :  { %610 = vmatpush.msrb.mxu0 %v587_v37  ;;  %640 = vmatpush.msrb.mxu1 %v635_v47 }
  0x98   :  { %527 = vmatpush.msra.mxu2 %v479_v48  ;;  %v634_v48 = vld [vmem:[%s1166_s9 + $0x60] sm:$0xff] }
  0x99   :  { %611 = vmatpush.msrb.mxu0 %v586_v38  ;;  %641 = vmatpush.msrb.mxu1 %v634_v48 }
  0x9a   :  { %528 = vmatpush.msra.mxu2 %v477_v49  ;;  %v633_v49 = vld [vmem:[%s1166_s9 + $0x58] sm:$0xff] }
  0x9b   :  { %612 = vmatpush.msrb.mxu0 %v585_v42  ;;  %642 = vmatpush.msrb.mxu1 %v633_v49 }
  0x9c   :  { %529 = vmatpush.msra.mxu2 %v475_v50  ;;  %v632_v50 = vld [vmem:[%s1166_s9 + $0x50] sm:$0xff] }
  0x9d   :  { %613 = vmatpush.msrb.mxu0 %v584_v43  ;;  %643 = vmatpush.msrb.mxu1 %v632_v50 }
  0x9e   :  { %530 = vmatpush.msra.mxu2 %v473_v30  ;;  %v631_v30 = vld [vmem:[%s1166_s9 + $0x48] sm:$0xff] }
  0x9f   :  { %614 = vmatpush.msrb.mxu0 %v583_v44  ;;  %644 = vmatpush.msrb.mxu1 %v631_v30 }
  0xa0   :  { %531 = vmatpush.msra.mxu2 %v471_v53  ;;  %v629_v53 = vld [vmem:[%s1166_s9 + $0x38] sm:$0xff] }
  0xa1   :  { %645 = vmatpush.msrb.mxu1 %v630_v52 }
  0xa2   :  { %532 = vmatpush.msra.mxu2 %v469_v55  ;;  %v627_v55 = vld [vmem:[%s1166_s9 + $0x28] sm:$0xff] }
  0xa3   :  { %646 = vmatpush.msrb.mxu1 %v629_v53 }
  0xa4   :  { %533 = vmatpush.msra.mxu2 %v467_v57  ;;  %v625_v57 = vld [vmem:[%s1166_s9 + $0x18] sm:$0xff] }
  0xa5   :  { %647 = vmatpush.msrb.mxu1 %v628_v54 }
  0xa7   :  { %648 = vmatpush.msrb.mxu1 %v627_v55 }
  0xa9   :  { %649 = vmatpush.msrb.mxu1 %v626_v56 }
  0xab   :  { %650 = vmatpush.msrb.mxu1 %v625_v57 }
  0xbd   :  { %v264_v60 = vpop.f32.mrf.mxu0 }
  0xc1   :  { %v1082_v51 = vpop.f32.mrf.mxu3 }
  0xc9   :  { %v284_v62 = vpop.f32.mrf.mxu1 }
  0xdd   :  { %v1087_v61 = vpop.f32.mrf.mxu0 }
  0xe1   :  { %v421_v63 = vpop.f32.mrf.mxu3 }
  0xe2   :  { %v422_v1 = vadd.f32 %v421_v63, %v264_v60  ;;  %v557_v60 = vld [vmem:[#allocation10 + $0x68] sm:$0xff] }
  0xe3   :  { %562 = vmatpush.msra.mxu3 %v557_v60 }
  0xe4   :  { %vm424_vm0 = vcmp.gt.f32.partialorder %v422_v1, 0.0  ;;  %v425_v4 = vmul.f32 0.2, %v422_v1 }
  0xe5   :  { %563 = vmatpush.msra.mxu3 %v556_v3 }
  0xe6   :  { %v426_v7 = vsel %vm424_vm0, %v422_v1, %v425_v4  ;;  %v555_v4 = vld [vmem:[#allocation10 + $0x58] sm:$0xff] }
  0xe7   :  { %459 = vmatmul.f32.vlgmr.msra.gmra.mxu0 %v426_v7  ;;  %564 = vmatpush.msra.mxu3 %v555_v4  ;;  %v552_v7 = vld [vmem:[#allocation10 + $0x40] sm:$0xff]  ;;  %v304_v15 = vpop.f32.mrf.mxu2 }
  0xe9   :  { %565 = vmatpush.msra.mxu3 %v554_v5 }
  0xea   :  { %v1089_v17 = vpop.f32.mrf.mxu1 }
  0xeb   :  { %566 = vmatpush.msra.mxu3 %v553_v6 }
  0xed   :  { %567 = vmatpush.msra.mxu3 %v552_v7 }
  0xef   :  { %568 = vmatpush.msra.mxu3 %v551_v8 }
  0xf1   :  { %569 = vmatpush.msra.mxu3 %v550_v9 }
  0xf3   :  { %570 = vmatpush.msra.mxu3 %v549_v10 }
  0xf5   :  { %571 = vmatpush.msra.mxu3 %v548_v11 }
  0xf7   :  { %572 = vmatpush.msra.mxu3 %v547_v12 }
  0xf9   :  { %573 = vmatpush.msra.mxu3 %v546_v13 }
  0xfb   :  { %574 = vmatpush.msra.mxu3 %v545_v14 }
  0xfd   :  { %575 = vmatpush.msra.mxu3 %v544_v16 }
 0x108   :  { %v1091_v21 = vpop.f32.mrf.mxu2 }
 0x164   :  { %v460_v63 = vpop.f32.mrf.mxu0 }
 0x165   :  { %v461_v0 = vadd.f32 %v460_v63, %v284_v62  ;;  %v624_v63 = vld [vmem:[%s1166_s9 + $0x10] sm:$0xff] }
 0x166   :  { %651 = vmatpush.msrb.mxu1 %v624_v63 }
 0x167   :  { %vm463_vm1 = vcmp.gt.f32.partialorder %v461_v0, 0.0  ;;  %v464_v1 = vmul.f32 0.2, %v461_v0 }
 0x169   :  { %v465_v2 = vsel %vm463_vm1, %v461_v0, %v464_v1  ;;  %v623_v0 = vld [vmem:[%s1166_s9 + $0x8] sm:$0xff]  ;;  %v622_v1 = vld [vmem:[%s1166_s9] sm:$0xff] }
 0x16a   :  { %514 = vmatmul.f32.vlgmr.msra.gmra.mxu1 %v465_v2  ;;  %534 = vmatmul.f32.vlgmr.msra.gmra.mxu2 %v465_v2 }
 0x16b   :  { %652 = vmatpush.msrb.mxu1 %v623_v0 }
 0x16d   :  { %653 = vmatpush.msrb.mxu1 %v622_v1 }
 0x1e7   :  { %v515_v24 = vpop.f32.mrf.mxu1 }
 0x1e8   :  { %v516_v26 = vadd.f32 %v515_v24, %v304_v15 }
 0x1ea   :  { %660 = vst [vmem:[#allocation14] sm:$0xff] %v516_v26 }
 0x1eb   :  { %683 = dma.vmem_to_hbm [thread:$0]  %s679_s22, 128, %s681_s25, [#allocation15]  }
 0x1ed   :  { %v535_v29 = vpop.f32.mrf.mxu2 }
 0x1ee   :  { %v536_v32 = vadd.f32 %v535_v29, %v1082_v51 }
 0x1f0   :  { %v539_v34 = vmul.f32 0.5, %v536_v32  ;;  %661 = vst [vmem:[#allocation16] sm:$0xff] %v536_v32 }
 0x1f1   :  { %694 = dma.vmem_to_hbm [thread:$0]  %s690_s27, 128, %s692_s13, [#allocation15]  }
 0x1f2   :  { %v540_v36 = vmul.f32 1.442695, %v539_v34 }
 0x1f4   :  { %728 = vpow2.f32 %v540_v36 }
 0x1fa   :  { %v729_v40 = vpop.eup %728 }
 0x1fb   :  { %v542_v51 = vmul.f32 %v729_v40, %v538_v39 }
 0x1fd   :  { %v543_v41 = vadd.f32 %v542_v51, %v516_v26 }
 0x1ff   :  { %576 = vmatmul.f32.vlgmr.msra.gmra.mxu3 %v543_v41 }
 0x282   :  { %v577_v58 = vpop.f32.mrf.mxu3 }
 0x283   :  { %v578_v59 = vadd.f32 %v577_v58, %v1087_v61 }
 0x285   :  { %vm580_vm2 = vcmp.gt.f32.partialorder %v578_v59, 0.0  ;;  %v581_v60 = vmul.f32 0.2, %v578_v59 }
 0x287   :  { %v582_v62 = vsel %vm580_vm2, %v578_v59, %v581_v60 }
 0x288   :  { %615 = vmatmul.f32.vlgmr.msrb.gmra.mxu0 %v582_v62 }
 0x305   :  { %v616_v61 = vpop.f32.mrf.mxu0 }
 0x306   :  { %v617_v2 = vadd.f32 %v616_v61, %v1089_v17 }
 0x308   :  { %vm619_vm3 = vcmp.gt.f32.partialorder %v617_v2, 0.0  ;;  %v620_v3 = vmul.f32 0.2, %v617_v2 }
 0x30a   :  { %v621_v4 = vsel %vm619_vm3, %v617_v2, %v620_v3 }
 0x30b   :  { %654 = vmatmul.f32.vlgmr.msrb.gmra.mxu1 %v621_v4 }
 0x388   :  { %v655_v5 = vpop.f32.mrf.mxu1 }
 0x389   :  { %v656_v6 = vadd.f32 %v655_v5, %v1091_v21 }
 0x38b   :  { %730 = vtanh.f32 %v656_v6 }
 0x391   :  { %v731_v7 = vpop.eup %730 }
 0x392   :  { %659 = vst [vmem:[#allocation13] sm:$0xff] %v731_v7 }
 0x393   :  { %672 = dma.vmem_to_hbm [thread:$0]  %s668_s14, 128, %s670_s4, [#allocation4]  }
 0x394   :  { %956 = dma.done.wait [#allocation4], 128  }
 0x395   :  { %957 = vsyncadd [#allocation4], 4294967168 }
 0x396   :  { %958 = dma.done.wait [#allocation15], 256  }
 0x397   :  { %959 = vsyncadd [#allocation15], 4294967040 }
 0x398   :  { %707 = vsyncpa [#allocation3], 1 }
 0x399   :  { %708 = vsyncpa [#allocation6], 1 }
 0x39a   :  { %709 = vsyncpa [#allocation9], 1 }
 0x39b   :  { %710 = vsyncpa [#allocation12], 1 }
 0x39c   :  { %711 = vsyncpa [#allocation4], 1 }
 0x39d   :  { %712 = vsyncpa [#allocation15], 1 }

</bundles_post_ra>
